<compile_context>
chip_gen: v7x
topology: tpu7x:2x2x1
jax: 0.10.0
libtpu: 0.0.40
codegen_flags: <defaults>
</compile_context>

<pallas_src>
import functools

import jax
import jax.numpy as jnp
from jax.experimental import pallas as pl
from jax.experimental.pallas import tpu as pltpu

KW = 5                     # kernel_size 5 -> conv kernel shape [1, 5]
PAD = (KW - 1) // 2        # padding [0, 2]
_LANE_DENSE_LIMIT = 1024   # max W*C on either side of the banded matmul


# ------------------------------ kernels ------------------------------------


def _lane_dense_kernel(x_ref, w_ref, b_ref, o_ref, *, use_res: bool):
    """Banded-matmul path.

    x_ref: (TR, W*Cin)          rows with (W, Cin) flattened onto lanes
    w_ref: (W*Cin, Wout*Cout)   banded conv weight (taps + zero W-pad + W-stride
                                + BN scale folded in by the wrapper)
    b_ref: (1, Wout*Cout)       folded BN bias tiled per W position (f32)
    o_ref: (TR, Wout*Cout)      f32 output
    """
    x = x_ref[...]                                     # whole block, used twice
    y = jnp.dot(x, w_ref[...], preferred_element_type=jnp.float32)
    y = jnp.maximum(y + b_ref[...], 0.0)               # bias + ReLU (f32)
    if use_res:
        # stride == 1 and Cin == Cout here, so input lane (w*Cin + c) lines up
        # exactly with output lane (w*Cout + c): residual is a plain add.
        y = y + x.astype(jnp.float32)
    o_ref[...] = y.astype(o_ref.dtype)


def _channels_last_kernel(x_ref, w_ref, b_ref, o_ref, *, use_res: bool):
    """Fallback path for very wide W*Cin: channels-last layout.

    x_ref: (TR, W + 2*PAD, Cin)   W-padded input rows
    w_ref: (KW, Cin, Cout)        conv taps (BN scale folded in)
    b_ref: (1, Cout)              folded BN bias (f32)
    o_ref: (TR, W, Cout)          f32 output

    KW shifted (TR*W, Cin) @ (Cin, Cout) matmuls accumulated in f32; windows
    are sliced straight from the ref.
    """
    wo = o_ref.shape[1]
    acc = jnp.zeros(o_ref.shape, jnp.float32)
    for kw in range(KW):
        acc += jax.lax.dot_general(
            x_ref[:, kw:kw + wo, :], w_ref[kw],
            dimension_numbers=(((2,), (0,)), ((), ())),
            preferred_element_type=jnp.float32)
    y = jnp.maximum(acc + b_ref[...], 0.0)              # bias + ReLU (f32)
    if use_res:
        y = y + x_ref[:, PAD:PAD + wo, :].astype(jnp.float32)
    o_ref[...] = y.astype(o_ref.dtype)


# --------------------------- hardware / tiling ------------------------------


def _round_up(x: int, m: int) -> int:
    return (x + m - 1) // m * m


@functools.lru_cache(maxsize=1)
def _vmem_capacity_bytes() -> int:
    """Physical VMEM per TensorCore; conservative 64 MiB (v7x) fallback."""
    try:
        return int(pltpu.get_tpu_info().vmem_capacity_bytes)
    except Exception:
        return 64 << 20


@functools.lru_cache(maxsize=1)
def _auto_compute_dtype():
    """bf16 MXU operands on v6e+/v7x, f32 on older / unknown parts."""
    try:
        kind = jax.devices()[0].device_kind.lower()
    except Exception:
        return jnp.float32
    for old in ("v2", "v3", "v4", "v5"):
        if old in kind:
            return jnp.float32
    return jnp.bfloat16


def _plan_row_tiles(rows: int, row_in_b: int, row_out_b: int, const_b: int):
    """Pick a row tile (multiple of 16, or the full row count), grid size and a
    generation-aware vmem limit."""
    cap = _vmem_capacity_bytes()
    # Budget for the double-buffered streaming row tiles; reserve room for the
    # constants (which the pipeline also double-buffers) and compiler scratch.
    budget = max(4 << 20, int(cap * 0.6) - 2 * const_b)
    per_row = 2 * (row_in_b + row_out_b)                # in+out, double-buffered
    tr = (budget // max(per_row, 1)) // 16 * 16
    tr = max(16, min(tr, 8192))
    # Megacore (v7x has 2 TensorCores): prefer >=2 "parallel" grid steps as
    # long as each step still moves >=1 MiB (per-step overhead stays amortised).
    half = _round_up(-(-rows // 2), 16)
    if half * (row_in_b + row_out_b) >= (1 << 20):
        tr = min(tr, half)
    # Never exceed the row count; a full-extent leading block is always legal,
    # so small inputs get a single block and no row padding is ever needed.
    tr = min(tr, rows)
    grid = -(-rows // tr)                               # ragged last block is OK
    need = 2 * tr * (row_in_b + row_out_b) + 2 * const_b + (2 << 20)
    vmem_limit = int(max(16 << 20, min(int(cap * 0.85), need)))
    return int(tr), int(grid), vmem_limit


# ------------------------------ forward -------------------------------------


def _forward_lane_dense(x_rows4, w_taps, bias, *, n, c_in, c_out, h_out, w,
                        w_out, rows, stride, use_res, compute_dtype):
    # Flatten (W, Cin) onto the lane axis.  No jnp.pad pass: zero W-padding and
    # the W-stride are baked into the banded weight below.
    xf = x_rows4.reshape(rows, w * c_in).astype(compute_dtype)

    # bigw[w_in*Cin + ci, j*Cout + co] = w_taps[kw, ci, co] where
    # w_in == j*stride - PAD + kw, else 0.  Built with an exact gather (no
    # multi-MiB one-hot broadcast intermediate, no matmul rounding).
    kw_idx = jnp.arange(w)[:, None] - (jnp.arange(w_out)[None, :] * stride - PAD)
    valid = (kw_idx >= 0) & (kw_idx < KW)                         # (W, Wout)
    gathered = w_taps[jnp.clip(kw_idx, 0, KW - 1)]                # (W,Wout,Cin,Cout)
    bigw = jnp.where(valid[:, :, None, None], gathered, 0.0)
    bigw = (bigw.transpose(0, 2, 1, 3)
                .reshape(w * c_in, w_out * c_out).astype(compute_dtype))
    bias_lanes = jnp.tile(bias, (w_out,)).reshape(1, w_out * c_out)   # f32

    in_itemsize = jnp.dtype(compute_dtype).itemsize
    row_in_b = w * c_in * in_itemsize
    row_out_b = w_out * c_out * 4
    const_b = bigw.size * in_itemsize + bias_lanes.size * 4
    tr, grid, vmem_limit = _plan_row_tiles(rows, row_in_b, row_out_b, const_b)

    out2d = pl.pallas_call(
        functools.partial(_lane_dense_kernel, use_res=use_res),
        out_shape=jax.ShapeDtypeStruct((rows, w_out * c_out), jnp.float32),
        grid_spec=pltpu.PrefetchScalarGridSpec(
            num_scalar_prefetch=0,
            grid=(grid,),
            in_specs=[
                pl.BlockSpec((tr, w * c_in), lambda r: (r, 0)),
                pl.BlockSpec((w * c_in, w_out * c_out), lambda r: (0, 0)),
                pl.BlockSpec((1, w_out * c_out), lambda r: (0, 0)),
            ],
            out_specs=pl.BlockSpec((tr, w_out * c_out), lambda r: (r, 0)),
        ),
        compiler_params=pltpu.CompilerParams(
            dimension_semantics=("parallel",),
            vmem_limit_bytes=vmem_limit),
        cost_estimate=pl.CostEstimate(
            flops=2 * rows * (w * c_in) * (w_out * c_out),
            transcendentals=0,
            bytes_accessed=rows * (row_in_b + row_out_b) + const_b),
    )(xf, bigw, bias_lanes)

    return out2d.reshape(n, h_out, w_out, c_out)


def _forward_channels_last(x_rows4, w_taps, bias, *, n, c_in, c_out, h_out, w,
                           w_out, rows, stride, use_res, compute_dtype):
    wp = w + 2 * PAD
    # The W-pad composes with the surrounding relayout inside the same jit.
    x_pad = jnp.pad(x_rows4.reshape(rows, w, c_in),
                    ((0, 0), (PAD, PAD), (0, 0))).astype(compute_dtype)
    taps = w_taps.astype(compute_dtype)
    bias2d = bias.reshape(1, c_out)                                # f32

    in_itemsize = jnp.dtype(compute_dtype).itemsize
    row_in_b = wp * c_in * in_itemsize
    row_out_b = w * c_out * 4
    const_b = taps.size * in_itemsize + bias2d.size * 4
    tr, grid, vmem_limit = _plan_row_tiles(rows, row_in_b, row_out_b, const_b)

    out_rows = pl.pallas_call(
        functools.partial(_channels_last_kernel, use_res=use_res),
        out_shape=jax.ShapeDtypeStruct((rows, w, c_out), jnp.float32),
        grid_spec=pltpu.PrefetchScalarGridSpec(
            num_scalar_prefetch=0,
            grid=(grid,),
            in_specs=[
                pl.BlockSpec((tr, wp, c_in), lambda r: (r, 0, 0)),
                pl.BlockSpec((KW, c_in, c_out), lambda r: (0, 0, 0)),
                pl.BlockSpec((1, c_out), lambda r: (0, 0)),
            ],
            out_specs=pl.BlockSpec((tr, w, c_out), lambda r: (r, 0, 0)),
        ),
        compiler_params=pltpu.CompilerParams(
            dimension_semantics=("parallel",),
            vmem_limit_bytes=vmem_limit),
        cost_estimate=pl.CostEstimate(
            flops=2 * rows * w * KW * c_in * c_out,
            transcendentals=0,
            bytes_accessed=rows * (row_in_b + row_out_b) + const_b),
    )(x_pad, taps, bias2d)

    out = out_rows.reshape(n, h_out, w, c_out)
    if stride > 1:
        # TODO(synk): this rare very-wide-channel strided fallback still
        # computes all W columns and subsamples here; moving the W-stride
        # in-kernel would halve its output HBM traffic.
        out = out[:, :, ::stride, :]
    return out


def qinverted_residual_forward_nhwc(x_nhwc, conv_w, bn_gamma, bn_beta, bn_mean,
                                    bn_var, *, stride: int, eps: float = 1e-5,
                                    compute_dtype=None):
    """QInvertedResidual forward, channels-last (no layout transposes)."""
    n, h, w, c_in = x_nhwc.shape
    c_out = conv_w.shape[0]
    use_res = (c_in == c_out) and (stride == 1)
    if compute_dtype is None:
        compute_dtype = _auto_compute_dtype()

    h_out = (h - 1) // stride + 1
    w_out = (w + 2 * PAD - KW) // stride + 1          # == (w - 1)//stride + 1

    # Fold BN (inference): y = conv(x)*scale + bias; scale folds into weights
    # so the kernel epilogue is only bias-add + ReLU.
    scale = bn_gamma / jnp.sqrt(bn_var + eps)                     # (Cout,)
    bias = bn_beta - bn_mean * scale                              # (Cout,)
    w_taps = jnp.transpose(conv_w[:, :, 0, :], (2, 1, 0)) * scale[None, None, :]

    # The [1, KW] kernel never mixes H, so the H-stride is pure row selection.
    x_rows4 = x_nhwc[:, ::stride]                                 # (N,Hout,W,Cin)
    rows = n * h_out

    kwargs = dict(n=n, c_in=c_in, c_out=c_out, h_out=h_out, w=w, w_out=w_out,
                  rows=rows, stride=stride, use_res=use_res,
                  compute_dtype=compute_dtype)
    if w * c_in <= _LANE_DENSE_LIMIT and w_out * c_out <= _LANE_DENSE_LIMIT:
        return _forward_lane_dense(x_rows4, w_taps, bias, **kwargs)
    return _forward_channels_last(x_rows4, w_taps, bias, **kwargs)


def qinverted_residual_forward(x_nchw, conv_w, bn_gamma, bn_beta, bn_mean,
                               bn_var, *, stride: int, eps: float = 1e-5,
                               compute_dtype=None):
    """QInvertedResidual forward (BatchNorm in inference mode), NCHW layout.

    x_nchw : (N, Cin, H, W) f32
    conv_w : (Cout, Cin, 1, KW) f32   (PyTorch Conv2d weight layout)
    BN params: (Cout,) each.
    """
    x_nhwc = jnp.transpose(x_nchw, (0, 2, 3, 1))
    out_nhwc = qinverted_residual_forward_nhwc(
        x_nhwc, conv_w, bn_gamma, bn_beta, bn_mean, bn_var,
        stride=stride, eps=eps, compute_dtype=compute_dtype)
    return jnp.transpose(out_nhwc, (0, 3, 1, 2))


# ----------------------------- reference ------------------------------------


def _reference(x_nchw, conv_w, bn_gamma, bn_beta, bn_mean, bn_var,
               *, stride: int, eps: float = 1e-5):
    """Pure-JAX reference mirroring the PyTorch forward (BN in eval mode)."""
    y = jax.lax.conv_general_dilated(
        x_nchw, conv_w,
        window_strides=(stride, stride),
        padding=((0, 0), (PAD, PAD)),
        dimension_numbers=("NCHW", "OIHW", "NCHW"),
        precision=jax.lax.Precision.HIGHEST)
    scale = (bn_gamma / jnp.sqrt(bn_var + eps)).reshape(1, -1, 1, 1)
    bias = (bn_beta - bn_mean * bn_gamma / jnp.sqrt(bn_var + eps)
            ).reshape(1, -1, 1, 1)
    y = jnp.maximum(y * scale + bias, 0.0)
    if x_nchw.shape[1] == conv_w.shape[0] and stride == 1:
        y = y + x_nchw
    return y


# -------------------------------- main ---------------------------------------

if __name__ == "__main__":
    key = jax.random.PRNGKey(0)

    configs = [
        # (N, Cin, Cout, H, W, stride)
        (2, 8, 8, 8, 16, 1),        # lane-dense, residual
        (2, 8, 16, 8, 16, 2),       # lane-dense, strided
        (1, 64, 64, 8, 16, 1),      # lane-dense (1024-wide lanes), residual
        (1, 64, 96, 16, 16, 2),     # lane-dense (1024 -> 768 lanes), strided
        (1, 160, 160, 8, 16, 1),    # channels-last fallback, residual
        (1, 160, 192, 16, 16, 2),   # channels-last fallback, strided
    ]

    def build_case(idx):
        n, ci, co, hh, ww, s = configs[idx]
        kcfg = jax.random.fold_in(key, idx)
        kx, kw_, kg, kb, km, kv = jax.random.split(kcfg, 6)
        x = jax.random.normal(kx, (n, ci, hh, ww), jnp.float32)
        conv_w = 0.1 * jax.random.normal(kw_, (co, ci, 1, KW), jnp.float32)
        gamma = 1.0 + 0.1 * jax.random.normal(kg, (co,), jnp.float32)
        beta = 0.1 * jax.random.normal(kb, (co,), jnp.float32)
        mean = 0.1 * jax.random.normal(km, (co,), jnp.float32)
        var = jnp.abs(jax.random.normal(kv, (co,), jnp.float32)) + 0.5
        return x, (conv_w, gamma, beta, mean, var), s

    # Strict check: f32 operands against the f32 reference.
    for idx in range(len(configs)):
        x, params, s = build_case(idx)
        fwd = jax.jit(functools.partial(qinverted_residual_forward,
                                        stride=s, compute_dtype=jnp.float32))
        out = jax.block_until_ready(fwd(x, *params))
        ref = _reference(x, *params, stride=s)
        assert out.shape == ref.shape, (idx, out.shape, ref.shape)
        err = float(jnp.max(jnp.abs(out - ref)))
        assert err < 1e-3, (idx, err)

    # bf16 MXU-operand path (v6e/v7x perf feedback): same kernels with bf16
    # inputs/weights, f32 accumulate + epilogue.  The looser tolerance only
    # covers the expected bf16 operand rounding; the f32 runs above are the
    # strict correctness check for the identical kernel code path.
    for idx in (0, 2, 4):
        x, params, s = build_case(idx)
        fwd = jax.jit(functools.partial(qinverted_residual_forward,
                                        stride=s, compute_dtype=jnp.bfloat16))
        out = jax.block_until_ready(fwd(x, *params))
        ref = _reference(x, *params, stride=s)
        err = float(jnp.max(jnp.abs(out - ref)))
        tol = 2e-2 * (1.0 + float(jnp.max(jnp.abs(ref))))
        assert err < tol, (idx, err, tol)

    print("KERNEL_OK")
</pallas_src>

<mosaic_0001>
module attributes {stable_mosaic.version = 11 : i64} {
  func.func @_lane_dense_kernel(%arg0: i32, %arg1: memref<16x128xf32, #tpu.memory_space<vmem>>, %arg2: memref<128x128xf32, #tpu.memory_space<vmem>>, %arg3: memref<1x128xf32, #tpu.memory_space<vmem>>, %arg4: memref<16x128xf32, #tpu.memory_space<vmem>>) attributes {dimension_semantics = [#tpu.dimension_semantics<parallel>], iteration_bounds = array<i64: 1>, scalar_prefetch = 0 : i64, scratch_operands = 0 : i64, tpu.core_type = #tpu.core_type<tc>, window_params = [{transform_indices = @transform_0, window_bounds = array<i64: 16, 128>}, {pipeline_mode = #tpu.pipeline_mode<synchronous>, transform_indices = @transform_1, window_bounds = array<i64: 128, 128>}, {pipeline_mode = #tpu.pipeline_mode<synchronous>, transform_indices = @transform_2, window_bounds = array<i64: 1, 128>}, {transform_indices = @transform_3, window_bounds = array<i64: 16, 128>}]} {
    %c0 = arith.constant 0 : index
    %c0_0 = arith.constant 0 : index
    %0 = vector.load %arg1[%c0, %c0_0] : memref<16x128xf32, #tpu.memory_space<vmem>>, vector<16x128xf32>
    %c0_1 = arith.constant 0 : index
    %c0_2 = arith.constant 0 : index
    %1 = vector.load %arg2[%c0_1, %c0_2] : memref<128x128xf32, #tpu.memory_space<vmem>>, vector<128x128xf32>
    %cst = arith.constant dense<0.000000e+00> : vector<16x128xf32>
    %2 = tpu.matmul %0, %1, %cst {dimension_numbers = #tpu.dot_dimension_numbers<[1], [0], [0], [1], [0, 0, 1, 1], [], []>} : vector<16x128xf32>, vector<128x128xf32>, vector<16x128xf32> -> vector<16x128xf32>
    %c0_3 = arith.constant 0 : index
    %c0_4 = arith.constant 0 : index
    %3 = vector.load %arg3[%c0_3, %c0_4] : memref<1x128xf32, #tpu.memory_space<vmem>>, vector<1x128xf32>
    %4 = vector.broadcast %3 : vector<1x128xf32> to vector<16x128xf32>
    %5 = arith.addf %2, %4 : vector<16x128xf32>
    %cst_5 = arith.constant 0.000000e+00 : f32
    %6 = vector.broadcast %cst_5 : f32 to vector<16x128xf32>
    %7 = arith.maximumf %5, %6 : vector<16x128xf32>
    %8 = arith.addf %7, %0 : vector<16x128xf32>
    %c0_6 = arith.constant 0 : index
    %c0_7 = arith.constant 0 : index
    %9 = vector.load %arg4[%c0_6, %c0_7] : memref<16x128xf32, #tpu.memory_space<vmem>>, vector<16x128xf32>
    tpu.vector_store %arg4[%c0_6, %c0_7], %8 {strides = array<i32>} : memref<16x128xf32, #tpu.memory_space<vmem>>, vector<16x128xf32>,
    return
  }
  func.func @transform_0(%arg0: i32) -> (i32, i32) {
    %c0_i32 = arith.constant 0 : i32
    %c0_i32_0 = arith.constant 0 : i32
    return %arg0, %c0_i32 : i32, i32
  }
  func.func @transform_1(%arg0: i32) -> (i32, i32) {
    %c0_i32 = arith.constant 0 : i32
    %c0_i32_0 = arith.constant 0 : i32
    %c0_i32_1 = arith.constant 0 : i32
    return %c0_i32, %c0_i32_0 : i32, i32
  }
  func.func @transform_2(%arg0: i32) -> (i32, i32) {
    %c0_i32 = arith.constant 0 : i32
    %c0_i32_0 = arith.constant 0 : i32
    %c0_i32_1 = arith.constant 0 : i32
    return %c0_i32, %c0_i32_0 : i32, i32
  }
  func.func @transform_3(%arg0: i32) -> (i32, i32) {
    %c0_i32 = arith.constant 0 : i32
    %c0_i32_0 = arith.constant 0 : i32
    return %arg0, %c0_i32 : i32, i32
  }
}

</mosaic_0001>

<bundles_post_ra>
// kernel: tile.8
= control target key start
LH: loop header
LB: loop body
LE: loop exit
PB: predicated region body
PF: predicated region fallthrough
CT: control target
= control target key end

     0   :  { %s28_s0 = inlined_call_operand.vmem [shape: f32[8], index: 0, kind: input, shape index: {}]   ;;  %s29_s1 = inlined_call_operand.vmem [shape: f32[16,8], index: 1, kind: output, shape index: {}]  }
   0x1   :  { %v4_v0 = vld [vmem:[%s28_s0] ss:$0 sm:$0xff] }
   0x2   :  { %5 = vst [vmem:[%s29_s1] sm:$0xff] %v4_v0  ;;  %8 = vst [vmem:[%s29_s1 + $0x8] sm:$0xff] %v4_v0 }

// kernel: tile.9
= control target key start
LH: loop header
LB: loop body
LE: loop exit
PB: predicated region body
PF: predicated region fallthrough
CT: control target
= control target key end

     0   :  { %s131_s10 = smov 120   ;;  %s132_s11 = smov 104   ;;  %vm3_vm0 = vcmask 64512   ;;  %vm9_vm1 = vcmask 1048512   ;;  %vm15_vm2 = vcmask 982912   ;;  %vm21_vm3 = vcmask 917312   ;;  %s207_s0 = inlined_call_operand.vmem [shape: f32[16,8], index: 0, kind: input, shape index: {}]   ;;  %s208_s1 = inlined_call_operand.vmem [shape: f32[1,128], index: 1, kind: output, shape index: {}]  }
   0x1   :  { %v101_v0 = vld [vmem:[%s207_s0 + $0xf] sm:$0x1]   ;;  %v103_v1 = vld [vmem:[%s207_s0 + $0xd] sm:$0x1]   ;;  %v102_v2 = vld [vmem:[%s207_s0 + $0xe] sm:$0x1]  }
   0x2   :  { %7 = vrot.lane.b32.xlu0 %v101_v0, %s131_s10  ;;  %19 = vrot.lane.b32.xlu1 %v103_v1, %s132_s11  ;;  %v104_v3 = vld [vmem:[%s207_s0 + $0xc] sm:$0x1]   ;;  %s133_s16 = smov 112   ;;  %s134_s17 = smov 96   ;;  %v105_v4 = vld [vmem:[%s207_s0 + $0xb] sm:$0x1]  }
   0x3   :  { %v106_v5 = vld [vmem:[%s207_s0 + $0xa] sm:$0x1]   ;;  %v2_v6 = vld [vmem:[%s207_s0] sm:$0x1]   ;;  %s135_s24 = smov 88   ;;  %s136_s25 = smov 80  }
   0x4   :  { %4 = vst.msk [vmem:[#allocation0] sm:$0x1] %vm3_vm0, %v2_v6   ;;  %v107_v7 = vld [vmem:[%s207_s0 + $0x9] sm:$0x1]   ;;  %v108_v8 = vld [vmem:[%s207_s0 + $0x8] sm:$0x1]  }
   0x5   :  { %s137_s30 = smov 72   ;;  %s138_s2 = smov 64   ;;  %v109_v9 = vld [vmem:[%s207_s0 + $0x7] sm:$0x1]   ;;  %v110_v10 = vld [vmem:[%s207_s0 + $0x6] sm:$0x1]  }
   0x6   :  { %13 = vrot.lane.b32.xlu0 %v102_v2, %s133_s16  ;;  %25 = vrot.lane.b32.xlu1 %v104_v3, %s134_s17  ;;  %s139_s7 = smov 56   ;;  %s140_s8 = smov 48   ;;  %v111_v11 = vld [vmem:[%s207_s0 + $0x5] sm:$0x1]   ;;  %v112_v12 = vld [vmem:[%s207_s0 + $0x4] sm:$0x1]  }
   0x7   :  { %s141_s13 = smov 40   ;;  %s142_s14 = smov 32   ;;  %v113_v13 = vld [vmem:[%s207_s0 + $0x3] sm:$0x1]   ;;  %v114_v14 = vld [vmem:[%s207_s0 + $0x2] sm:$0x1]  }
   0x8   :  { %s143_s19 = smov 24   ;;  %s144_s20 = smov 16   ;;  %v115_v15 = vld [vmem:[%s207_s0 + $0x1] sm:$0x1]   ;;  %vm27_vm4 = vcmask 851712   ;;  %vm33_vm5 = vcmask 786112  }
   0x9   :  { %s145_s0 = smov 8   ;;  %vm39_vm6 = vcmask 720512   ;;  %vm45_vm7 = vcmask 654912   ;;  %vm51_vm8 = vcmask 589312   ;;  %vm57_vm9 = vcmask 523712  }
   0xa   :  { %31 = vrot.lane.b32.xlu0 %v105_v4, %s135_s24  ;;  %37 = vrot.lane.b32.xlu1 %v106_v5, %s136_s25  ;;  %vm63_vm10 = vcmask 458112   ;;  %vm69_vm11 = vcmask 392512   ;;  %vm75_vm12 = vcmask 326912   ;;  %vm81_vm13 = vcmask 261312  }
   0xb   :  { %vm87_vm14 = vcmask 195712   ;;  %vm93_vm15 = vcmask 130112  }
   0xe   :  { %43 = vrot.lane.b32.xlu0 %v107_v7, %s137_s30  ;;  %49 = vrot.lane.b32.xlu1 %v108_v8, %s138_s2 }
  0x12   :  { %55 = vrot.lane.b32.xlu0 %v109_v9, %s139_s7  ;;  %61 = vrot.lane.b32.xlu1 %v110_v10, %s140_s8 }
  0x16   :  { %67 = vrot.lane.b32.xlu0 %v111_v11, %s141_s13  ;;  %73 = vrot.lane.b32.xlu1 %v112_v12, %s142_s14 }
  0x1a   :  { %79 = vrot.lane.b32.xlu0 %v113_v13, %s143_s19  ;;  %85 = vrot.lane.b32.xlu1 %v114_v14, %s144_s20 }
  0x1e   :  { %91 = vrot.lane.b32.xlu0 %v115_v15, %s145_s0 }
  0x74   :  { %v8_v16 = vpop.permute.xlu0 %7   ;;  %v20_v17 = vpop.permute.xlu1 %19  }
  0x75   :  { %10 = vst.msk [vmem:[#allocation0] sm:$0x1] %vm9_vm1, %v8_v16  }
  0x78   :  { %v14_v18 = vpop.permute.xlu0 %13   ;;  %v26_v19 = vpop.permute.xlu1 %25  }
  0x79   :  { %16 = vst.msk [vmem:[#allocation0] sm:$0x1] %vm15_vm2, %v14_v18  }
  0x7a   :  { %22 = vst.msk [vmem:[#allocation0] sm:$0x1] %vm21_vm3, %v20_v17  }
  0x7b   :  { %28 = vst.msk [vmem:[#allocation0] sm:$0x1] %vm27_vm4, %v26_v19  }
  0x7c   :  { %v32_v20 = vpop.permute.xlu0 %31   ;;  %v38_v21 = vpop.permute.xlu1 %37  }
  0x7d   :  { %34 = vst.msk [vmem:[#allocation0] sm:$0x1] %vm33_vm5, %v32_v20  }
  0x7e   :  { %40 = vst.msk [vmem:[#allocation0] sm:$0x1] %vm39_vm6, %v38_v21  }
  0x80   :  { %v44_v22 = vpop.permute.xlu0 %43   ;;  %v50_v23 = vpop.permute.xlu1 %49  }
  0x81   :  { %46 = vst.msk [vmem:[#allocation0] sm:$0x1] %vm45_vm7, %v44_v22  }
  0x82   :  { %52 = vst.msk [vmem:[#allocation0] sm:$0x1] %vm51_vm8, %v50_v23  }
  0x84   :  { %v56_v24 = vpop.permute.xlu0 %55   ;;  %v62_v25 = vpop.permute.xlu1 %61  }
  0x85   :  { %58 = vst.msk [vmem:[#allocation0] sm:$0x1] %vm57_vm9, %v56_v24  }
  0x86   :  { %64 = vst.msk [vmem:[#allocation0] sm:$0x1] %vm63_vm10, %v62_v25  }
  0x88   :  { %v68_v26 = vpop.permute.xlu0 %67   ;;  %v74_v27 = vpop.permute.xlu1 %73  }
  0x89   :  { %70 = vst.msk [vmem:[#allocation0] sm:$0x1] %vm69_vm11, %v68_v26  }
  0x8a   :  { %76 = vst.msk [vmem:[#allocation0] sm:$0x1] %vm75_vm12, %v74_v27  }
  0x8c   :  { %v80_v28 = vpop.permute.xlu0 %79   ;;  %v86_v29 = vpop.permute.xlu1 %85  }
  0x8d   :  { %82 = vst.msk [vmem:[#allocation0] sm:$0x1] %vm81_vm13, %v80_v28  }
  0x8e   :  { %88 = vst.msk [vmem:[#allocation0] sm:$0x1] %vm87_vm14, %v86_v29  }
  0x90   :  { %v92_v30 = vpop.permute.xlu0 %91  }
  0x91   :  { %94 = vst.msk [vmem:[#allocation0] sm:$0x1] %vm93_vm15, %v92_v30  }
  0x98   :  { %v98_v31 = vld [vmem:[#allocation0] sm:$0x1] }
  0x99   :  { %100 = vst [vmem:[%s208_s1] sm:$0x1] %v98_v31 }

// kernel: qinverted_residual_forward.1
= control target key start
LH: loop header
LB: loop body
LE: loop exit
PB: predicated region body
PF: predicated region fallthrough
CT: control target
= control target key end

     0   :  { %s293_s1 = inlined_call_operand.vmem [shape: f32[128,128], index: 1, kind: input, shape index: {}]   ;;  %s294_s0 = inlined_call_operand.vmem [shape: f32[16,128], index: 0, kind: input, shape index: {}]   ;;  %s295_s2 = inlined_call_operand.vmem [shape: f32[1,128], index: 2, kind: input, shape index: {}]   ;;  %s296_s3 = inlined_call_operand.vmem [shape: f32[16,128], index: 3, kind: output, shape index: {}]  }
   0x1   :  { %v16_v0 = vld [vmem:[%s293_s1] sm:$0xff]  ;;  %v17_v1 = vld [vmem:[%s293_s1 + $0x8] sm:$0xff]  ;;  %v18_v2 = vld [vmem:[%s293_s1 + $0x10] sm:$0xff] }
   0x2   :  { %v178_v3 = vpack.c.bf16 %v17_v1, %v16_v0  ;;  %v19_v4 = vld [vmem:[%s293_s1 + $0x18] sm:$0xff]  ;;  %v20_v6 = vld [vmem:[%s293_s1 + $0x20] sm:$0xff]  ;;  %v21_v7 = vld [vmem:[%s293_s1 + $0x28] sm:$0xff] }
   0x3   :  { %v182_v5 = vpack.c.bf16 %v19_v4, %v18_v2  ;;  %v186_v8 = vpack.c.bf16 %v21_v7, %v20_v6  ;;  %v14_v9 = vld [vmem:[%s294_s0] sm:$0xff]  ;;  %v22_v10 = vld [vmem:[%s293_s1 + $0x30] sm:$0xff]  ;;  %v23_v11 = vld [vmem:[%s293_s1 + $0x38] sm:$0xff] }
   0x4   :  { %179 = vmatprep.subr.bf16.mxu0 %v178_v3  ;;  %175 = vmatprep.mubr.f32.mxu0 %v14_v9  ;;  %v190_v12 = vpack.c.bf16 %v23_v11, %v22_v10  ;;  %v24_v13 = vld [vmem:[%s293_s1 + $0x40] sm:$0xff]  ;;  %v25_v14 = vld [vmem:[%s293_s1 + $0x48] sm:$0xff]  ;;  %v26_v16 = vld [vmem:[%s293_s1 + $0x50] sm:$0xff] }
   0x5   :  { %181 = vmatpush3.bf16.msra.mxu0 %v178_v3  ;;  %v194_v15 = vpack.c.bf16 %v25_v14, %v24_v13  ;;  %v27_v17 = vld [vmem:[%s293_s1 + $0x58] sm:$0xff]  ;;  %v28_v19 = vld [vmem:[%s293_s1 + $0x60] sm:$0xff]  ;;  %v29_v20 = vld [vmem:[%s293_s1 + $0x68] sm:$0xff] }
   0x6   :  { %183 = vmatprep.subr.bf16.mxu0 %v182_v5  ;;  %v198_v18 = vpack.c.bf16 %v27_v17, %v26_v16  ;;  %v202_v21 = vpack.c.bf16 %v29_v20, %v28_v19  ;;  %v30_v22 = vld [vmem:[%s293_s1 + $0x70] sm:$0xff]  ;;  %v31_v23 = vld [vmem:[%s293_s1 + $0x78] sm:$0xff]  ;;  %v15_v25 = vld [vmem:[%s294_s0 + $0x8] sm:$0xff] }
   0x7   :  { %v206_v24 = vpack.c.bf16 %v31_v23, %v30_v22  ;;  %v124_v26 = vld [vmem:[%s295_s2] ss:$0 sm:$0xff] }
   0x9   :  { %185 = vmatpush3.bf16.msra.mxu0 %v182_v5 }
   0xa   :  { %187 = vmatprep.subr.bf16.mxu0 %v186_v8 }
   0xd   :  { %189 = vmatpush3.bf16.msra.mxu0 %v186_v8 }
   0xe   :  { %191 = vmatprep.subr.bf16.mxu0 %v190_v12 }
  0x11   :  { %193 = vmatpush3.bf16.msra.mxu0 %v190_v12 }
  0x12   :  { %195 = vmatprep.subr.bf16.mxu0 %v194_v15 }
  0x15   :  { %197 = vmatpush3.bf16.msra.mxu0 %v194_v15 }
  0x16   :  { %199 = vmatprep.subr.bf16.mxu0 %v198_v18 }
  0x19   :  { %201 = vmatpush3.bf16.msra.mxu0 %v198_v18 }
  0x1a   :  { %203 = vmatprep.subr.bf16.mxu0 %v202_v21 }
  0x1d   :  { %205 = vmatpush3.bf16.msra.mxu0 %v202_v21 }
  0x1e   :  { %207 = vmatprep.subr.bf16.mxu0 %v206_v24 }
  0x21   :  { %209 = vmatpush3.bf16.msra.mxu0 %v206_v24 }
  0x24   :  { %176 = vmatmul.mubr.f32.vlgmr.msra.gmra.mrb[0].mxu0 %v15_v25 }
  0xf7   :  { %v177_v27 = vpop.f32.mrb[0].mxu0 }
  0xf8   :  { %v111_v28 = vadd.f32 %v177_v27, %v124_v26  ;;  %v105_v29 = vpop.f32.mrb[1].mxu0 }
  0xf9   :  { %v106_v30 = vadd.f32 %v124_v26, %v105_v29 }
  0xfa   :  { %v115_v31 = vmax.f32 %v111_v28, 0.0 }
  0xfb   :  { %v114_v32 = vmax.f32 %v106_v30, 0.0 }
  0xfc   :  { %v117_v33 = vadd.f32 %v115_v31, %v15_v25 }
  0xfd   :  { %v116_v34 = vadd.f32 %v114_v32, %v14_v9 }
  0xfe   :  { %119 = vst [vmem:[%s296_s3 + $0x8] sm:$0xff] %v117_v33 }
  0xff   :  { %118 = vst [vmem:[%s296_s3] sm:$0xff] %v116_v34 }

</bundles_post_ra>
